<compile_context>
chip_gen: v7x
topology: tpu7x:2x2x1
jax: 0.10.0
libtpu: 0.0.40
codegen_flags: <defaults>
</compile_context>

<pallas_src>
import jax
import jax.numpy as jnp
from jax.experimental import pallas as pl
from jax.experimental.pallas import tpu as pltpu


def mlp_kernel(x_ref, w1_ref, b1_ref, w2_ref, b2_ref, o_ref):
    # Hidden layer: (B, in) @ (in, H) on the MXU, bias + ReLU on the VPU.
    h = jnp.dot(x_ref[...], w1_ref[...], preferred_element_type=jnp.float32)
    h = jnp.maximum(h + b1_ref[...], 0.0)                  # (1, H) broadcasts over rows

    # Output layer (out_features == 1): VPU multiply + lane reduction instead of
    # an N=1 MXU matmul. w2_ref is the (1, H) row of the second Linear's weight.
    y = jnp.sum(h * w2_ref[...], axis=-1, keepdims=True)   # (B, 1)
    y = y + b2_ref[0]                                      # scalar bias from SMEM

    o_ref[...] = jax.nn.sigmoid(y).astype(o_ref.dtype)
    # NOTE: for very large B the (B, 1) output forces masked lane-width-1 stores;
    # at that scale emit a lane-dense (1, B) slab and reshape in the wrapper.


def mlp_forward(x, w1, b1, w2, b2):
    """x: (B, input_size) f32; w1: (input_size, hidden); b1: (hidden,)
       w2: (hidden, 1); b2: (1,)  ->  (B, 1) f32
    """
    B, _ = x.shape
    hidden = w1.shape[1]

    b1_row = b1.reshape(1, hidden)   # broadcastable bias row
    w2_row = w2.reshape(1, hidden)   # (hidden, 1) -> (1, hidden) for VPU reduce
    b2_1d = b2.reshape(1,)           # 1-element scalar -> SMEM

    # Whole problem is one kernel invocation: no grid, whole-array blocks in VMEM,
    # scalar bias in SMEM. (If this MLP is ever scaled up, tile over batch with a
    # "parallel" grid axis, keep w1/w2 index_maps constant so weights stay
    # VMEM-resident, and consider bf16 inputs for the first matmul.)
    return pl.pallas_call(
        mlp_kernel,
        out_shape=jax.ShapeDtypeStruct((B, 1), jnp.float32),
        in_specs=[
            pl.BlockSpec(memory_space=pltpu.MemorySpace.VMEM),   # x
            pl.BlockSpec(memory_space=pltpu.MemorySpace.VMEM),   # w1
            pl.BlockSpec(memory_space=pltpu.MemorySpace.VMEM),   # b1 (1, H)
            pl.BlockSpec(memory_space=pltpu.MemorySpace.VMEM),   # w2 (1, H)
            pl.BlockSpec(memory_space=pltpu.MemorySpace.SMEM),   # b2 (1,) scalar
        ],
        out_specs=pl.BlockSpec(memory_space=pltpu.MemorySpace.VMEM),
    )(x, w1, b1_row, w2_row, b2_1d)


if __name__ == "__main__":
    # Deterministic synthetic params/input (no checkpoint load).
    input_size = 32
    hidden_size = 64
    batch = 8

    key = jax.random.PRNGKey(0)
    kx, kw1, kb1, kw2, kb2 = jax.random.split(key, 5)

    x = jax.random.normal(kx, (batch, input_size), dtype=jnp.float32)
    # PyTorch nn.Linear stores weight as (out, in); we keep (in, out) for x @ W.
    w1 = jax.random.normal(kw1, (input_size, hidden_size), dtype=jnp.float32) * 0.1
    b1 = jax.random.normal(kb1, (hidden_size,), dtype=jnp.float32) * 0.1
    w2 = jax.random.normal(kw2, (hidden_size, 1), dtype=jnp.float32) * 0.1
    b2 = jax.random.normal(kb2, (1,), dtype=jnp.float32) * 0.1

    out = mlp_forward(x, w1, b1, w2, b2)
    out = jax.block_until_ready(out)

    # Pure-JAX reference check (matches PyTorch forward semantics).
    ref = jax.nn.sigmoid(jnp.maximum(x @ w1 + b1, 0.0) @ w2 + b2)
    assert out.shape == (batch, 1)
    assert jnp.allclose(out, ref, atol=1e-5, rtol=1e-5)

    print("KERNEL_OK")
</pallas_src>

<mosaic_0001>
module attributes {stable_mosaic.version = 11 : i64} {
  func.func @mlp_kernel(%arg0: memref<8x32xf32, #tpu.memory_space<vmem>>, %arg1: memref<32x64xf32, #tpu.memory_space<vmem>>, %arg2: memref<1x64xf32, #tpu.memory_space<vmem>>, %arg3: memref<1x64xf32, #tpu.memory_space<vmem>>, %arg4: memref<1xf32, #tpu.memory_space<smem>>, %arg5: memref<8x1xf32, #tpu.memory_space<vmem>>) attributes {dimension_semantics = [], scalar_prefetch = 0 : i64, scratch_operands = 0 : i64, tpu.core_type = #tpu.core_type<tc>} {
    %c0 = arith.constant 0 : index
    %c0_0 = arith.constant 0 : index
    %0 = vector.load %arg0[%c0, %c0_0] : memref<8x32xf32, #tpu.memory_space<vmem>>, vector<8x32xf32>
    %c0_1 = arith.constant 0 : index
    %c0_2 = arith.constant 0 : index
    %1 = vector.load %arg1[%c0_1, %c0_2] : memref<32x64xf32, #tpu.memory_space<vmem>>, vector<32x64xf32>
    %cst = arith.constant dense<0.000000e+00> : vector<8x64xf32>
    %2 = tpu.matmul %0, %1, %cst {dimension_numbers = #tpu.dot_dimension_numbers<[1], [0], [0], [1], [0, 0, 1, 1], [], []>} : vector<8x32xf32>, vector<32x64xf32>, vector<8x64xf32> -> vector<8x64xf32>
    %c0_3 = arith.constant 0 : index
    %c0_4 = arith.constant 0 : index
    %3 = vector.load %arg2[%c0_3, %c0_4] : memref<1x64xf32, #tpu.memory_space<vmem>>, vector<1x64xf32>
    %4 = vector.broadcast %3 : vector<1x64xf32> to vector<8x64xf32>
    %5 = arith.addf %2, %4 : vector<8x64xf32>
    %cst_5 = arith.constant 0.000000e+00 : f32
    %6 = vector.broadcast %cst_5 : f32 to vector<8x64xf32>
    %7 = arith.maximumf %5, %6 : vector<8x64xf32>
    %c0_6 = arith.constant 0 : index
    %c0_7 = arith.constant 0 : index
    %8 = vector.load %arg3[%c0_6, %c0_7] : memref<1x64xf32, #tpu.memory_space<vmem>>, vector<1x64xf32>
    %9 = vector.broadcast %8 : vector<1x64xf32> to vector<8x64xf32>
    %10 = arith.mulf %7, %9 : vector<8x64xf32>
    %cst_8 = arith.constant dense<0.000000e+00> : vector<8xf32>
    %11 = vector.multi_reduction <add>, %10, %cst_8 [1] : vector<8x64xf32> to vector<8xf32>
    %12 = vector.shape_cast %11 : vector<8xf32> to vector<8x1xf32>
    %c0_9 = arith.constant 0 : index
    %13 = memref.load %arg4[%c0_9] : memref<1xf32, #tpu.memory_space<smem>>
    %14 = vector.broadcast %13 : f32 to vector<8x1xf32>
    %15 = arith.addf %12, %14 : vector<8x1xf32>
    %16 = arith.negf %15 : vector<8x1xf32>
    %17 = math.exp %16 : vector<8x1xf32>
    %cst_10 = arith.constant 1.000000e+00 : f32
    %18 = vector.broadcast %cst_10 : f32 to vector<8x1xf32>
    %19 = arith.addf %18, %17 : vector<8x1xf32>
    %20 = arith.divf %18, %19 : vector<8x1xf32>
    %c0_11 = arith.constant 0 : index
    %c0_12 = arith.constant 0 : index
    %21 = vector.load %arg5[%c0_11, %c0_12] : memref<8x1xf32, #tpu.memory_space<vmem>>, vector<8x1xf32>
    tpu.vector_store %arg5[%c0_11, %c0_12], %20 {strides = array<i32>} : memref<8x1xf32, #tpu.memory_space<vmem>>, vector<8x1xf32>,
    return
  }
}

</mosaic_0001>

<bundles_post_ra>
// kernel: tpu_custom_call.1
= control target key start
LH: loop header
LB: loop body
LE: loop exit
PB: predicated region body
PF: predicated region fallthrough
CT: control target
= control target key end

     0   :  { %11 = vsyncpa [#allocation4], 0  ;;  %s328_s0 = inlined_call_operand.hbm [shape: f32[8,32], index: 0, kind: input, shape index: {}]   ;;  %s329_s1 = inlined_call_operand.hbm [shape: f32[32,64], index: 1, kind: input, shape index: {}]   ;;  %s330_s2 = inlined_call_operand.vmem [shape: f32[1,64], index: 2, kind: input, shape index: {}]   ;;  %s331_s3 = inlined_call_operand.vmem [shape: f32[1,64], index: 3, kind: input, shape index: {}]   ;;  %s332_s4 = inlined_call_operand.<no memory space> [shape: f32[1], index: 4, kind: input, shape index: {}]   ;;  %s333_s5 = inlined_call_operand.vmem [shape: f32[8,1], index: 5, kind: output, shape index: {}]  }
   0x1   :  { %12 = vsyncpa [#allocation6], 0  ;;  %s248_s18 = smov [#allocation3]   ;;  %s249_s20 = smov [#allocation5]  }
   0x2   :  { %s19_s19 = sshll.u32 %s248_s18, 4  ;;  %s28_s21 = sshll.u32 %s249_s20, 4  ;;  %s20_s19 = int_to_ptr.vmem [resolvable:$true] %s19_s19  ;;  %s285_s21 = int_to_ptr.vmem [resolvable:$true] %s28_s21 }
   0x3   :  { %s200_s24 = scalar_lea.hbm %s328_s0, 128 }
   0x4   :  { %p201_p0 = scmp.ne.s32.totalorder %s328_s0, %s200_s24  ;;  %p204_p1 = scmp.lt.u32.totalorder %s200_s24, %s328_s0 }
   0x6   :  { %p206_p2 = pnand %p204_p1, %p201_p0 }
   0x8   :  { %209 = shalt.err (!%p206_p2)
}
   0x9   :  { %s210_s29 = scalar_lea.vmem %s20_s19, 128  ;;  %p215_p4 = scmp.lt.s32.totalorder %s20_s19, %s20_s19 }
   0xa   :  { %p211_p3 = scmp.ne.s32.totalorder %s20_s19, %s210_s29  ;;  %p216_p5 = scmp.lt.s32.totalorder %s210_s29, %s210_s29 }
   0xc   :  { %p217_p6 = por %p216_p5, %p215_p4 }
   0xe   :  { %p218_p7 = pnand %p217_p6, %p211_p3 }
  0x10   :  { %221 = shalt.err (!%p218_p7)
}
  0x11   :  { %22 = dma.hbm_to_vmem [thread:$0]  %s328_s0, 128, %s20_s19, [#allocation4]  }
  0x12   :  { %s222_s9 = scalar_lea.hbm %s329_s1, 512 }
  0x13   :  { %p223_p8 = scmp.ne.s32.totalorder %s329_s1, %s222_s9  ;;  %p226_p9 = scmp.lt.u32.totalorder %s222_s9, %s329_s1 }
  0x15   :  { %p228_p10 = pnand %p226_p9, %p223_p8 }
  0x17   :  { %231 = shalt.err (!%p228_p10)
}
  0x18   :  { %s232_s14 = scalar_lea.vmem %s285_s21, 512  ;;  %p237_p12 = scmp.lt.s32.totalorder %s285_s21, %s285_s21 }
  0x19   :  { %p233_p11 = scmp.ne.s32.totalorder %s285_s21, %s232_s14  ;;  %p238_p13 = scmp.lt.s32.totalorder %s232_s14, %s232_s14 }
  0x1b   :  { %p239_p0 = por %p238_p13, %p237_p12 }
  0x1d   :  { %p240_p1 = pnand %p239_p0, %p233_p11 }
  0x1f   :  { %243 = shalt.err (!%p240_p1)
}
  0x20   :  { %s250_s0 = smov 128   ;;  %s251_s15 = smov 8  }
  0x21   :  { %34 = dma.hbm_to_vmem [thread:$0]  %s329_s1, 512, %s285_s21, [#allocation6], %s250_s0, %s250_s0, %s251_s15  }
  0x22   :  { %244 = dma.done.wait [#allocation4], 128  }
  0x23   :  { %245 = vsyncadd [#allocation4], 4294967168 }
  0x24   :  { %246 = dma.done.wait [#allocation6], 512  }
  0x25   :  { %247 = vsyncadd [#allocation6], 4294966784  ;;  %v252_v0 = vmov 0.0|0.0   ;;  %vm253_vm0 = vmmov 0   ;;  %v254_v1 = vmov 0.0   ;;  %v48_v2 = vld [vmem:[#allocation5] sm:$0xff]  ;;  %v147_v17 = vstv %s332_s4 }
  0x26   :  { %183 = vmatprep.subr.bf16.mxu0 %v252_v0  ;;  %180 = vmatprep.mubr.msk.f32.mxu0 %vm253_vm0, %v254_v1  ;;  %v49_v3 = vld [vmem:[#allocation5 + $0x8] sm:$0xff]  ;;  %v50_v4 = vld [vmem:[#allocation5 + $0x10] sm:$0xff]  ;;  %v51_v6 = vld [vmem:[#allocation5 + $0x18] sm:$0xff]  ;;  %vm59_vm1 = vcmask 261120   ;;  %vm142_vm2 = vcmask 523264   ;;  %vm155_vm3 = vcmask 7168  }
  0x27   :  { %v184_v5 = vpack.c.bf16 %v49_v3, %v48_v2  ;;  %v187_v7 = vpack.c.bf16 %v51_v6, %v50_v4  ;;  %v47_v8 = vld [vmem:[#allocation3] sm:$0xff] }
  0x28   :  { %v163_v9 = vld [vmem:[%s330_s2] ss:$0 sm:$0xff] }
  0x29   :  { %185 = vmatpush3.bf16.msra.mxu0 %v184_v5  ;;  %v165_v13 = vld [vmem:[%s331_s3] ss:$0 sm:$0xff] }
  0x2a   :  { %186 = vmatprep.subr.bf16.mxu0 %v252_v0 }
  0x2d   :  { %188 = vmatpush3.bf16.msra.mxu0 %v187_v7 }
  0x30   :  { %181 = vmatmul.mubr.msk.f32.vlgmr.msra.gmra.mrb[0].mxu0 %vm59_vm1, %v47_v8 }
 0x103   :  { %v129_v10 = vpop.f32.mrb[0].mxu0 }
 0x104   :  { %v130_v11 = vadd.f32 %v163_v9, %v129_v10  ;;  %v182_v12 = vpop.f32.mrb[1].mxu0 }
 0x106   :  { %v133_v14 = vmax.f32 %v130_v11, 0.0 }
 0x108   :  { %v141_v15 = vmul.f32 %v165_v13, %v133_v14 }
 0x10a   :  { %v143_v16 = vsel %vm142_vm2, %v141_v15, 0.0 }
 0x10b   :  { %144 = vadd.xlane.f32.xlu0 %v143_v16 }
 0x198   :  { %v145_v18 = vpop.xlane.xlu0 %144 }
 0x199   :  { %v148_v19 = vadd.f32 %v147_v17, %v145_v18 }
 0x19b   :  { %v166_v20 = vmul.f32 -1.442695, %v148_v19 }
 0x19d   :  { %196 = vpow2.f32 %v166_v20 }
 0x1a7   :  { %v197_v21 = vpop.eup %196 }
 0x1a8   :  { %v152_v22 = vadd.f32 1.0, %v197_v21 }
 0x1aa   :  { %198 = vrcp.f32 %v152_v22 }
 0x1b4   :  { %v199_v23 = vpop.eup %198 }
 0x1b5   :  { %156 = vst.msk [vmem:[%s333_s5] sm:$0xff] %vm155_vm3, %v199_v23 }
 0x1b6   :  { %161 = vsyncpa [#allocation4], 1 }
 0x1b7   :  { %162 = vsyncpa [#allocation6], 1 }

</bundles_post_ra>
